<compile_context>
chip_gen: v5e
topology: v5e:2x2
jax: 0.10.0
libtpu: 0.0.40
codegen_flags: <defaults>
</compile_context>

<pallas_src>
import jax
import jax.numpy as jnp
from jax import lax
from jax.experimental import pallas as pl
from jax.experimental.pallas import tpu as pltpu

_BLOCK_ROWS = 2048  # batch-tile size for large B (multiple of 8)


def _net_kernel(x_ref, w1_ref, b1_ref, w2_ref, b2_ref, out_ref):
    """One batch-tile of the fused 2-layer MLP forward.

    x_ref   : (TB, in_num)        f32 / bf16
    w1_ref  : (hidden, in_num)    torch layout (out_features, in_features)
    b1_ref  : (1, hidden)
    w2_ref  : (out_num, hidden)   torch layout
    b2_ref  : (1, out_num)
    out_ref : (TB, out_num)       f32
    """
    x = x_ref[...]
    # x @ W1^T on the MXU, no explicit transpose op (contract last dims).
    h1 = lax.dot_general(x, w1_ref[...], (((1,), (1,)), ((), ())),
                         preferred_element_type=jnp.float32)
    h1 = jax.nn.sigmoid(h1 + b1_ref[...])          # bias add + sigmoid in f32
    # h1 @ W2^T on the MXU.
    h2 = lax.dot_general(h1, w2_ref[...], (((1,), (1,)), ((), ())),
                         preferred_element_type=jnp.float32)
    out_ref[...] = (h2 + b2_ref[...]).astype(out_ref.dtype)


def prepare_params(w1, b1, w2, b2, dtype=jnp.float32):
    """One-time parameter layout (call at init time, NOT per forward).

    Weights keep torch.nn.Linear layout; biases become (1, N) rows so the
    hot path has zero transpose/reshape ops."""
    w1 = jnp.asarray(w1, dtype)                       # (hidden, in)
    w2 = jnp.asarray(w2, dtype)                       # (out, hidden)
    b1 = jnp.asarray(b1, jnp.float32).reshape(1, -1)  # (1, hidden)
    b2 = jnp.asarray(b2, jnp.float32).reshape(1, -1)  # (1, out)
    return w1, b1, w2, b2


@jax.jit
def net_forward(x, w1, b1, w2, b2):
    """x: (B, in_num); (w1, b1, w2, b2) from prepare_params."""
    B, in_num = x.shape
    hidden_num = w1.shape[0]
    out_num = w2.shape[0]

    # Match the streaming input dtype to the weights (bf16 halves HBM bytes at
    # large, mem-bound B; a no-op when everything is already f32).
    if x.dtype != w1.dtype:
        x = x.astype(w1.dtype)

    # Batch tiling: single shot for small B, _BLOCK_ROWS-row tiles otherwise.
    # Rows are independent, so ragged last tiles are safely handled by Pallas'
    # OOB padding / masked writeback.
    tb = B if B <= _BLOCK_ROWS else _BLOCK_ROWS
    grid = (pl.cdiv(B, tb),)

    inv = lambda shape: pl.BlockSpec(shape, lambda i: (0, 0))  # grid-invariant

    return pl.pallas_call(
        _net_kernel,
        out_shape=jax.ShapeDtypeStruct((B, out_num), jnp.float32),
        grid=grid,
        in_specs=[
            pl.BlockSpec((tb, in_num), lambda i: (i, 0)),   # x: tiled over batch
            inv((hidden_num, in_num)),                      # W1 (torch layout)
            inv((1, hidden_num)),                           # b1
            inv((out_num, hidden_num)),                     # W2 (torch layout)
            inv((1, out_num)),                              # b2
        ],
        out_specs=pl.BlockSpec((tb, out_num), lambda i: (i, 0)),
        compiler_params=pltpu.CompilerParams(
            dimension_semantics=("parallel",)),             # megacore on v7x
    )(x, w1, b1, w2, b2)


def _reference(x, w1, b1, w2, b2):
    h1 = jax.nn.sigmoid(x @ w1.T + b1)
    return h1 @ w2.T + b2


if __name__ == "__main__":
    # Small shapes implied by the module: Net(in_num, hidden_num, out_num)
    B, in_num, hidden_num, out_num = 8, 8, 32, 8

    key = jax.random.PRNGKey(0)
    kx, kw1, kb1, kw2, kb2 = jax.random.split(key, 5)

    # Deterministic init matching torch.nn.Linear's U(-1/sqrt(fan_in), +1/sqrt(fan_in))
    lim1 = 1.0 / jnp.sqrt(jnp.float32(in_num))
    lim2 = 1.0 / jnp.sqrt(jnp.float32(hidden_num))
    w1 = jax.random.uniform(kw1, (hidden_num, in_num), jnp.float32, -lim1, lim1)
    b1 = jax.random.uniform(kb1, (hidden_num,), jnp.float32, -lim1, lim1)
    w2 = jax.random.uniform(kw2, (out_num, hidden_num), jnp.float32, -lim2, lim2)
    b2 = jax.random.uniform(kb2, (out_num,), jnp.float32, -lim2, lim2)

    x = jax.random.normal(kx, (B, in_num), jnp.float32)

    params = prepare_params(w1, b1, w2, b2)   # one-time layout, outside hot path
    out = jax.block_until_ready(net_forward(x, *params))

    ref = _reference(x, w1, b1, w2, b2)
    assert out.shape == (B, out_num)
    assert jnp.allclose(out, ref, atol=1e-5, rtol=1e-5), "mismatch vs reference"

    print("KERNEL_OK")
</pallas_src>

<mosaic_0001>
module attributes {stable_mosaic.version = 11 : i64} {
  func.func @_net_kernel(%arg0: i32, %arg1: memref<8x8xf32, #tpu.memory_space<vmem>>, %arg2: memref<32x8xf32, #tpu.memory_space<vmem>>, %arg3: memref<1x32xf32, #tpu.memory_space<vmem>>, %arg4: memref<8x32xf32, #tpu.memory_space<vmem>>, %arg5: memref<1x8xf32, #tpu.memory_space<vmem>>, %arg6: memref<8x8xf32, #tpu.memory_space<vmem>>) attributes {dimension_semantics = [#tpu.dimension_semantics<parallel>], iteration_bounds = array<i64: 1>, scalar_prefetch = 0 : i64, scratch_operands = 0 : i64, tpu.core_type = #tpu.core_type<tc>, window_params = [{transform_indices = @transform_0, window_bounds = array<i64: 8, 8>}, {pipeline_mode = #tpu.pipeline_mode<synchronous>, transform_indices = @transform_1, window_bounds = array<i64: 32, 8>}, {pipeline_mode = #tpu.pipeline_mode<synchronous>, transform_indices = @transform_2, window_bounds = array<i64: 1, 32>}, {pipeline_mode = #tpu.pipeline_mode<synchronous>, transform_indices = @transform_3, window_bounds = array<i64: 8, 32>}, {pipeline_mode = #tpu.pipeline_mode<synchronous>, transform_indices = @transform_4, window_bounds = array<i64: 1, 8>}, {transform_indices = @transform_5, window_bounds = array<i64: 8, 8>}]} {
    %c0 = arith.constant 0 : index
    %c0_0 = arith.constant 0 : index
    %0 = vector.load %arg1[%c0, %c0_0] : memref<8x8xf32, #tpu.memory_space<vmem>>, vector<8x8xf32>
    %c0_1 = arith.constant 0 : index
    %c0_2 = arith.constant 0 : index
    %1 = vector.load %arg2[%c0_1, %c0_2] : memref<32x8xf32, #tpu.memory_space<vmem>>, vector<32x8xf32>
    %cst = arith.constant dense<0.000000e+00> : vector<8x32xf32>
    %2 = tpu.matmul %0, %1, %cst {dimension_numbers = #tpu.dot_dimension_numbers<[1], [1], [0], [0], [0, 0, 1, 0], [], []>} : vector<8x8xf32>, vector<32x8xf32>, vector<8x32xf32> -> vector<8x32xf32>
    %c0_3 = arith.constant 0 : index
    %c0_4 = arith.constant 0 : index
    %3 = vector.load %arg3[%c0_3, %c0_4] : memref<1x32xf32, #tpu.memory_space<vmem>>, vector<1x32xf32>
    %4 = vector.broadcast %3 : vector<1x32xf32> to vector<8x32xf32>
    %5 = arith.addf %2, %4 : vector<8x32xf32>
    %6 = arith.negf %5 : vector<8x32xf32>
    %7 = math.exp %6 : vector<8x32xf32>
    %cst_5 = arith.constant 1.000000e+00 : f32
    %8 = vector.broadcast %cst_5 : f32 to vector<8x32xf32>
    %9 = arith.addf %8, %7 : vector<8x32xf32>
    %10 = arith.divf %8, %9 : vector<8x32xf32>
    %c0_6 = arith.constant 0 : index
    %c0_7 = arith.constant 0 : index
    %11 = vector.load %arg4[%c0_6, %c0_7] : memref<8x32xf32, #tpu.memory_space<vmem>>, vector<8x32xf32>
    %cst_8 = arith.constant dense<0.000000e+00> : vector<8x8xf32>
    %12 = tpu.matmul %10, %11, %cst_8 {dimension_numbers = #tpu.dot_dimension_numbers<[1], [1], [0], [0], [0, 0, 1, 0], [], []>} : vector<8x32xf32>, vector<8x32xf32>, vector<8x8xf32> -> vector<8x8xf32>
    %c0_9 = arith.constant 0 : index
    %c0_10 = arith.constant 0 : index
    %13 = vector.load %arg5[%c0_9, %c0_10] : memref<1x8xf32, #tpu.memory_space<vmem>>, vector<1x8xf32>
    %14 = vector.broadcast %13 : vector<1x8xf32> to vector<8x8xf32>
    %15 = arith.addf %12, %14 : vector<8x8xf32>
    %c0_11 = arith.constant 0 : index
    %c0_12 = arith.constant 0 : index
    %16 = vector.load %arg6[%c0_11, %c0_12] : memref<8x8xf32, #tpu.memory_space<vmem>>, vector<8x8xf32>
    tpu.vector_store %arg6[%c0_11, %c0_12], %15 {strides = array<i32>} : memref<8x8xf32, #tpu.memory_space<vmem>>, vector<8x8xf32>,
    return
  }
  func.func @transform_0(%arg0: i32) -> (i32, i32) {
    %c0_i32 = arith.constant 0 : i32
    %c0_i32_0 = arith.constant 0 : i32
    return %arg0, %c0_i32 : i32, i32
  }
  func.func @transform_1(%arg0: i32) -> (i32, i32) {
    %c0_i32 = arith.constant 0 : i32
    %c0_i32_0 = arith.constant 0 : i32
    %c0_i32_1 = arith.constant 0 : i32
    return %c0_i32, %c0_i32_0 : i32, i32
  }
  func.func @transform_2(%arg0: i32) -> (i32, i32) {
    %c0_i32 = arith.constant 0 : i32
    %c0_i32_0 = arith.constant 0 : i32
    %c0_i32_1 = arith.constant 0 : i32
    return %c0_i32, %c0_i32_0 : i32, i32
  }
  func.func @transform_3(%arg0: i32) -> (i32, i32) {
    %c0_i32 = arith.constant 0 : i32
    %c0_i32_0 = arith.constant 0 : i32
    %c0_i32_1 = arith.constant 0 : i32
    return %c0_i32, %c0_i32_0 : i32, i32
  }
  func.func @transform_4(%arg0: i32) -> (i32, i32) {
    %c0_i32 = arith.constant 0 : i32
    %c0_i32_0 = arith.constant 0 : i32
    %c0_i32_1 = arith.constant 0 : i32
    return %c0_i32, %c0_i32_0 : i32, i32
  }
  func.func @transform_5(%arg0: i32) -> (i32, i32) {
    %c0_i32 = arith.constant 0 : i32
    %c0_i32_0 = arith.constant 0 : i32
    return %arg0, %c0_i32 : i32, i32
  }
}

</mosaic_0001>

<bundles_post_ra>
// kernel: net_forward.1
= control target key start
LH: loop header
LB: loop body
LE: loop exit
PB: predicated region body
PF: predicated region fallthrough
CT: control target
= control target key end

     0   :  { %vm30_vm0 = vcmask 64512   ;;  %s241_s0 = inlined_call_operand.vmem [shape: f32[8,8], index: 0, kind: input, shape index: {}]   ;;  %s242_s1 = inlined_call_operand.vmem [shape: f32[32,8], index: 1, kind: input, shape index: {}]   ;;  %s243_s2 = inlined_call_operand.vmem [shape: f32[1,32], index: 2, kind: input, shape index: {}]   ;;  %s244_s3 = inlined_call_operand.vmem [shape: f32[8,32], index: 3, kind: input, shape index: {}]   ;;  %s245_s4 = inlined_call_operand.vmem [shape: f32[1,8], index: 4, kind: input, shape index: {}]   ;;  %s246_s5 = inlined_call_operand.hbm [shape: f32[8,8], index: 5, kind: output, shape index: {}]  }
   0x1   :  { %v25_v0 = vld [vmem:[%s242_s1 + $0x18] sm:$0xff]  ;;  %v24_v1 = vld [vmem:[%s242_s1 + $0x10] sm:$0xff] }
   0x2   :  { %134 = vmatpush.xpose.msk.msra.mxu0 %vm30_vm0, %v25_v0 }
   0x3   :  { %10 = vsyncpa [#allocation3], 0  ;;  %v23_v2 = vld [vmem:[%s242_s1 + $0x8] sm:$0xff]  ;;  %v22_v3 = vld [vmem:[%s242_s1] sm:$0xff]  ;;  %vm90_vm1 = vcmask 261120   ;;  %s125_s9 = sshll.u32 %s246_s5, 4  ;;  %s126_s9 = int_to_ptr.hbm [resolvable:$true] %s125_s9 }
   0x4   :  { %v21_v4 = vld [vmem:[%s241_s0] sm:$0xff] }
   0x5   :  { %v85_v5 = vld [vmem:[%s244_s3] sm:$0xff] }
   0x6   :  { %135 = vmatpush.xpose.msk.msra.mxu0 %vm30_vm0, %v24_v1  ;;  %140 = vmatpush.xpose.msk.msra.mxu1 %vm90_vm1, %v85_v5  ;;  %v143_v6 = vld [vmem:[%s243_s2] ss:$0 sm:$0xff]  ;;  %s175_s2 = smov [#allocation2]  }
   0x7   :  { %v144_v22 = vld [vmem:[%s245_s4] ss:$0 sm:$0xff]  ;;  %s123_s3 = sshll.u32 %s175_s2, 4  ;;  %s124_s3 = int_to_ptr.vmem [resolvable:$true] %s123_s3 }
   0xa   :  { %136 = vmatpush.xpose.msk.msra.mxu0 %vm30_vm0, %v23_v2 }
   0xe   :  { %137 = vmatpush.xpose.msk.msra.mxu0 %vm30_vm0, %v22_v3 }
  0x11   :  { %138 = vmatmul.msk.f32.vlgmr.msra.gmra.mxu0 %vm30_vm0, %v21_v4 }
  0x8e   :  { %v63_v7 = vpop.f32.mrf.mxu0 }
  0x8f   :  { %v64_v8 = vadd.f32 %v143_v6, %v63_v7 }
  0x91   :  { %v139_v9 = vmul.f32 -1.442695, %v64_v8 }
  0x93   :  { %145 = vpow2.f32 %v139_v9 }
  0x99   :  { %v146_v10 = vpop.eup %145 }
  0x9a   :  { %v69_v11 = vadd.f32 1.0, %v146_v10 }
  0x9c   :  { %147 = vrcp.f32 %v69_v11  ;;  %v81_v15 = vand.u32 2147483648, %v69_v11  ;;  %v79_v17 = vand.u32 2147483647, %v69_v11  ;;  %vm75_vm3 = vweird.f32 %v69_v11 }
  0x9e   :  { %v82_v19 = vor.u32 1.1754944e-38, %v81_v15  ;;  %vm80_vm5 = vcmp.eq.f32.partialorder %v79_v17, 8.507059e+37 }
  0xa2   :  { %v148_v12 = vpop.eup %147 }
  0xa3   :  { %v71_v13 = vmul.f32 %v148_v12, %v69_v11  ;;  %vm76_vm2 = vweird.f32 %v148_v12 }
  0xa4   :  { %vm77_vm4 = vmor %vm75_vm3, %vm76_vm2 }
  0xa5   :  { %v72_v14 = vsub.f32 1.0, %v71_v13 }
  0xa7   :  { %v73_v16 = vmul.f32 %v148_v12, %v72_v14 }
  0xa9   :  { %v74_v18 = vadd.f32 %v148_v12, %v73_v16 }
  0xab   :  { %v78_v20 = vsel %vm77_vm4, %v148_v12, %v74_v18 }
  0xac   :  { %v83_v21 = vsel %vm80_vm5, %v82_v19, %v78_v20 }
  0xad   :  { %141 = vmatmul.msk.f32.vlgmr.msra.gmra.mxu1 %vm90_vm1, %v83_v21 }
 0x12a   :  { %v114_v23 = vpop.f32.mrf.mxu1 }
 0x12b   :  { %v115_v24 = vadd.f32 %v144_v22, %v114_v23 }
 0x12d   :  { %117 = vst.msk [vmem:[#allocation2] sm:$0xff] %vm30_vm0, %v115_v24 }
 0x12e   :  { %128 = dma.vmem_to_hbm [thread:$0]  %s124_s3, 128, %s126_s9, [#allocation3]  }
 0x12f   :  { %173 = dma.done.wait [#allocation3], 128  }
 0x130   :  { %174 = vsyncadd [#allocation3], 4294967168 }
 0x131   :  { %133 = vsyncpa [#allocation3], 1 }

</bundles_post_ra>
